<compile_context>
chip_gen: v7x
topology: tpu7x:2x2x1
jax: 0.10.0
libtpu: 0.0.40
codegen_flags: <defaults>
</compile_context>

<pallas_src>
import functools

import jax
import jax.numpy as jnp
from jax.experimental import pallas as pl
from jax.experimental.pallas import tpu as pltpu

_LANES = 128
_SUBLANES = 8


def _bce_blur_kernel(pred_ref, true_ref, out_ref, *, n, inv_alpha,
                     block_rows, needs_mask):
    i = pl.program_id(0)

    # Inputs are DMA'd in their native dtype; cast in-kernel.
    x = pred_ref[...].astype(jnp.float32)
    z = true_ref[...].astype(jnp.float32)

    # One exp per element, shared by the stable BCE term and the sigmoid.
    e = jnp.exp(-jnp.abs(x))                                   # EUP
    bce = jnp.maximum(x, 0.0) - x * z + jnp.log1p(e)           # EUP (log1p)

    # sigmoid(x) = where(x>=0, 1, e) / (1 + e).  Approx reciprocal keeps the
    # division off the (v7x-binding) EUP slot; two Newton steps on the VPU
    # restore full f32 precision nearly for free.
    denom = 1.0 + e
    r = pl.reciprocal(denom, approx=True)
    r = r * (2.0 - denom * r)
    r = r * (2.0 - denom * r)
    p = jnp.where(x >= 0.0, 1.0, e) * r

    alpha_factor = 1.0 - jnp.exp((p - z - 1.0) * inv_alpha)    # EUP
    loss = bce * alpha_factor

    def _write(vals):
        # (br, 128) -> (8, 128) partial via pure vreg-aligned VPU adds; the
        # cross-lane/cross-sublane reduction happens once, in the wrapper.
        partial = vals.reshape(-1, _SUBLANES, _LANES).sum(axis=0)
        out_ref[...] = partial.reshape(1, _SUBLANES, _LANES)

    if needs_mask:
        last = pl.num_programs(0) - 1

        @pl.when(i != last)
        def _unmasked():
            _write(loss)

        @pl.when(i == last)
        def _masked():
            # Only the last block can contain padded / out-of-bounds rows.
            # Select (not multiply) keeps garbage inf/NaN lanes out of the sum.
            base = i * (block_rows * _LANES)
            rows = jax.lax.broadcasted_iota(jnp.int32, loss.shape, 0)
            cols = jax.lax.broadcasted_iota(jnp.int32, loss.shape, 1)
            valid = (base + rows * _LANES + cols) < n
            _write(jnp.where(valid, loss, 0.0))
    else:
        _write(loss)


def bce_blur_with_logits_loss(pred, true, alpha=0.05, block_rows=4096):
    """Pallas TPU implementation of BCEBlurWithLogitsLoss(alpha).forward."""
    assert pred.shape == true.shape, (pred.shape, true.shape)
    n = int(pred.size)
    assert n > 0

    # ---- lane-dense layout: flatten, pad (only if needed) to (rows8, 128) ---
    rows = pl.cdiv(n, _LANES)
    rows8 = ((rows + _SUBLANES - 1) // _SUBLANES) * _SUBLANES
    padded = rows8 * _LANES

    pred_flat = pred.reshape(-1)
    true_flat = true.reshape(-1)
    if padded != n:  # n % 1024 == 0 => pure reshape, no copy on the hot path
        pred_flat = jnp.pad(pred_flat, (0, padded - n))
        true_flat = jnp.pad(true_flat, (0, padded - n))
    pred2 = pred_flat.reshape(rows8, _LANES)
    true2 = true_flat.reshape(rows8, _LANES)

    # (8,128)-aligned tile; default 4096 rows = 2 MiB / input / buffer (f32).
    br = max(_SUBLANES, (min(block_rows, rows8) // _SUBLANES) * _SUBLANES)
    num_blocks = pl.cdiv(rows8, br)
    # Mask is needed iff the grid covers more elements than n (lane padding,
    # sublane padding, or a ragged last block).
    needs_mask = (num_blocks * br * _LANES) != n

    kernel = functools.partial(
        _bce_blur_kernel,
        n=n,
        inv_alpha=1.0 / (alpha + 1e-4),
        block_rows=br,
        needs_mask=needs_mask,
    )

    cp_kwargs = dict(dimension_semantics=("parallel",))
    dbuf_bytes = 2 * br * _LANES * (pred.dtype.itemsize + true.dtype.itemsize)
    if dbuf_bytes > 12 * 1024 * 1024:
        # Only needed when a caller requests tiles beyond the default budget.
        cp_kwargs["vmem_limit_bytes"] = min(dbuf_bytes + (4 << 20), 128 << 20)

    partials = pl.pallas_call(
        kernel,
        out_shape=jax.ShapeDtypeStruct((num_blocks, _SUBLANES, _LANES),
                                       jnp.float32),
        grid_spec=pltpu.PrefetchScalarGridSpec(
            num_scalar_prefetch=0,
            grid=(num_blocks,),
            in_specs=[
                pl.BlockSpec((br, _LANES), lambda i: (i, 0)),
                pl.BlockSpec((br, _LANES), lambda i: (i, 0)),
            ],
            out_specs=pl.BlockSpec((1, _SUBLANES, _LANES),
                                   lambda i: (i, 0, 0)),
        ),
        compiler_params=pltpu.CompilerParams(**cp_kwargs),
    )(pred2, true2)

    # Tiny final reduction (num_blocks * 1024 f32) + mean, outside the kernel.
    return jnp.sum(partials) * (1.0 / n)


def _reference_bce_blur(pred, true, alpha=0.05):
    """Pure-JAX reference mirroring the PyTorch module exactly."""
    x = pred.astype(jnp.float32)
    z = true.astype(jnp.float32)
    bce = jnp.maximum(x, 0.0) - x * z + jnp.log1p(jnp.exp(-jnp.abs(x)))
    p = jax.nn.sigmoid(x)
    dx = p - z
    alpha_factor = 1.0 - jnp.exp((dx - 1.0) / (alpha + 1e-4))
    return jnp.mean(bce * alpha_factor)


if __name__ == "__main__":
    key = jax.random.PRNGKey(0)
    k1, k2, k3, k4, k5, k6, k7 = jax.random.split(key, 7)

    # Main example: (batch, anchors, H, W) objectness-style logits/targets.
    shape = (2, 4, 16, 16)
    pred = jax.random.normal(k1, shape, dtype=jnp.float32) * 2.0
    true = jax.random.bernoulli(k2, p=0.3, shape=shape).astype(jnp.float32)
    loss = bce_blur_with_logits_loss(pred, true)
    jax.block_until_ready(loss)
    ref = _reference_bce_blur(pred, true)
    assert jnp.allclose(loss, ref, rtol=1e-4, atol=1e-6), (loss, ref)

    # Ragged size -> exercises the (last-block-only) padding mask.
    shape2 = (3, 5, 7, 11)
    pred2 = jax.random.normal(k3, shape2, dtype=jnp.float32)
    true2 = jax.random.bernoulli(k4, p=0.5, shape=shape2).astype(jnp.float32)
    loss2 = bce_blur_with_logits_loss(pred2, true2)
    jax.block_until_ready(loss2)
    ref2 = _reference_bce_blur(pred2, true2)
    assert jnp.allclose(loss2, ref2, rtol=1e-4, atol=1e-6), (loss2, ref2)

    # Same ragged input, tiny block -> multi-block grid + masked last block.
    loss2b = bce_blur_with_logits_loss(pred2, true2, block_rows=8)
    jax.block_until_ready(loss2b)
    assert jnp.allclose(loss2b, ref2, rtol=1e-4, atol=1e-6), (loss2b, ref2)

    # Multi-block 'parallel' grid with per-block partial outputs (no mask).
    shape3 = (2, 4, 32, 32)
    pred3 = jax.random.normal(k5, shape3, dtype=jnp.float32)
    true3 = jax.random.bernoulli(k6, p=0.4, shape=shape3).astype(jnp.float32)
    loss3 = bce_blur_with_logits_loss(pred3, true3, block_rows=16)
    jax.block_until_ready(loss3)
    ref3 = _reference_bce_blur(pred3, true3)
    assert jnp.allclose(loss3, ref3, rtol=1e-4, atol=1e-6), (loss3, ref3)

    # Narrow target dtype (bf16): cast stays in-kernel, halving the target
    # HBM stream on mem-bound v5e/v6e.
    true4 = jax.random.bernoulli(k7, p=0.3, shape=shape).astype(jnp.bfloat16)
    loss4 = bce_blur_with_logits_loss(pred, true4)
    jax.block_until_ready(loss4)
    ref4 = _reference_bce_blur(pred, true4)
    assert jnp.allclose(loss4, ref4, rtol=1e-4, atol=1e-6), (loss4, ref4)

    print("KERNEL_OK")
</pallas_src>

<mosaic_0001>
module attributes {stable_mosaic.version = 11 : i64} {
  func.func @_bce_blur_kernel(%arg0: i32, %arg1: memref<16x128xf32, #tpu.memory_space<vmem>>, %arg2: memref<16x128xf32, #tpu.memory_space<vmem>>, %arg3: memref<1x8x128xf32, #tpu.memory_space<vmem>>) attributes {dimension_semantics = [#tpu.dimension_semantics<parallel>], iteration_bounds = array<i64: 1>, scalar_prefetch = 0 : i64, scratch_operands = 0 : i64, tpu.core_type = #tpu.core_type<tc>, window_params = [{transform_indices = @transform_0, window_bounds = array<i64: 16, 128>}, {transform_indices = @transform_1, window_bounds = array<i64: 16, 128>}, {transform_indices = @transform_2, window_bounds = array<i64: 1, 8, 128>}]} {
    %c0 = arith.constant 0 : index
    %c0_0 = arith.constant 0 : index
    %0 = vector.load %arg1[%c0, %c0_0] : memref<16x128xf32, #tpu.memory_space<vmem>>, vector<16x128xf32>
    %c0_1 = arith.constant 0 : index
    %c0_2 = arith.constant 0 : index
    %1 = vector.load %arg2[%c0_1, %c0_2] : memref<16x128xf32, #tpu.memory_space<vmem>>, vector<16x128xf32>
    %2 = math.absf %0 : vector<16x128xf32>
    %cst = arith.constant 0.000000e+00 : f32
    %3 = vector.broadcast %cst : f32 to vector<16x128xf32>
    %4 = arith.subf %3, %2 : vector<16x128xf32>
    %5 = math.exp %4 : vector<16x128xf32>
    %cst_3 = arith.constant 0.000000e+00 : f32
    %6 = vector.broadcast %cst_3 : f32 to vector<16x128xf32>
    %7 = arith.maximumf %0, %6 : vector<16x128xf32>
    %8 = arith.mulf %0, %1 : vector<16x128xf32>
    %9 = arith.subf %7, %8 : vector<16x128xf32>
    %10 = math.log1p %5 : vector<16x128xf32>
    %11 = arith.addf %9, %10 : vector<16x128xf32>
    %cst_4 = arith.constant 1.000000e+00 : f32
    %12 = vector.broadcast %cst_4 : f32 to vector<16x128xf32>
    %13 = arith.addf %12, %5 : vector<16x128xf32>
    %14 = tpu.reciprocal %13 {approx = true} : vector<16x128xf32> -> vector<16x128xf32>
    %15 = arith.mulf %13, %14 : vector<16x128xf32>
    %cst_5 = arith.constant 2.000000e+00 : f32
    %16 = vector.broadcast %cst_5 : f32 to vector<16x128xf32>
    %17 = arith.subf %16, %15 : vector<16x128xf32>
    %18 = arith.mulf %14, %17 : vector<16x128xf32>
    %19 = arith.mulf %13, %18 : vector<16x128xf32>
    %cst_6 = arith.constant 2.000000e+00 : f32
    %20 = vector.broadcast %cst_6 : f32 to vector<16x128xf32>
    %21 = arith.subf %20, %19 : vector<16x128xf32>
    %22 = arith.mulf %18, %21 : vector<16x128xf32>
    %cst_7 = arith.constant 0.000000e+00 : f32
    %23 = vector.broadcast %cst_7 : f32 to vector<16x128xf32>
    %24 = arith.cmpf oge, %0, %23 : vector<16x128xf32>
    %cst_8 = arith.constant 1.000000e+00 : f32
    %25 = vector.broadcast %cst_8 : f32 to vector<16x128xf32>
    %26 = arith.select %24, %25, %5 : vector<16x128xi1>, vector<16x128xf32>
    %27 = arith.mulf %26, %22 : vector<16x128xf32>
    %28 = arith.subf %27, %1 : vector<16x128xf32>
    %cst_9 = arith.constant 1.000000e+00 : f32
    %29 = vector.broadcast %cst_9 : f32 to vector<16x128xf32>
    %30 = arith.subf %28, %29 : vector<16x128xf32>
    %cst_10 = arith.constant 19.9600792 : f32
    %31 = vector.broadcast %cst_10 : f32 to vector<16x128xf32>
    %32 = arith.mulf %30, %31 : vector<16x128xf32>
    %33 = math.exp %32 : vector<16x128xf32>
    %cst_11 = arith.constant 1.000000e+00 : f32
    %34 = vector.broadcast %cst_11 : f32 to vector<16x128xf32>
    %35 = arith.subf %34, %33 : vector<16x128xf32>
    %36 = arith.mulf %11, %35 : vector<16x128xf32>
    %37 = vector.shape_cast %36 : vector<16x128xf32> to vector<2x8x128xf32>
    %cst_12 = arith.constant dense<0.000000e+00> : vector<8x128xf32>
    %38 = vector.multi_reduction <add>, %37, %cst_12 [0] : vector<2x8x128xf32> to vector<8x128xf32>
    %39 = vector.shape_cast %38 : vector<8x128xf32> to vector<1x8x128xf32>
    %c0_13 = arith.constant 0 : index
    %c0_14 = arith.constant 0 : index
    %c0_15 = arith.constant 0 : index
    %40 = vector.load %arg3[%c0_13, %c0_14, %c0_15] : memref<1x8x128xf32, #tpu.memory_space<vmem>>, vector<1x8x128xf32>
    tpu.vector_store %arg3[%c0_13, %c0_14, %c0_15], %39 {strides = array<i32>} : memref<1x8x128xf32, #tpu.memory_space<vmem>>, vector<1x8x128xf32>,
    return
  }
  func.func @transform_0(%arg0: i32) -> (i32, i32) {
    %c0_i32 = arith.constant 0 : i32
    %c0_i32_0 = arith.constant 0 : i32
    return %arg0, %c0_i32 : i32, i32
  }
  func.func @transform_1(%arg0: i32) -> (i32, i32) {
    %c0_i32 = arith.constant 0 : i32
    %c0_i32_0 = arith.constant 0 : i32
    return %arg0, %c0_i32 : i32, i32
  }
  func.func @transform_2(%arg0: i32) -> (i32, i32, i32) {
    %c0_i32 = arith.constant 0 : i32
    %c0_i32_0 = arith.constant 0 : i32
    %c0_i32_1 = arith.constant 0 : i32
    return %arg0, %c0_i32, %c0_i32_0 : i32, i32, i32
  }
}

</mosaic_0001>

<bundles_post_ra>
// kernel: tpu_custom_call.1
= control target key start
LH: loop header
LB: loop body
LE: loop exit
PB: predicated region body
PF: predicated region fallthrough
CT: control target
= control target key end

     0   :  { %7 = vsyncpa [#allocation3], 0  ;;  %s295_s0 = inlined_call_operand.hbm [shape: f32[16,128], index: 0, kind: input, shape index: {}]   ;;  %s296_s1 = inlined_call_operand.hbm [shape: f32[16,128], index: 1, kind: input, shape index: {}]   ;;  %s297_s2 = inlined_call_operand.hbm [shape: f32[1,8,128], index: 2, kind: output, shape index: {}]  }
   0x1   :  { %8 = vsyncpa [#allocation6], 0 }
   0x2   :  { %9 = vsyncpa [#allocation4], 0  ;;  %s227_s9 = smov [#allocation2]   ;;  %s155_s13 = scalar_lea.hbm %s295_s0, 256 }
   0x3   :  { %s15_s10 = sshll.u32 %s227_s9, 4  ;;  %p156_p0 = scmp.ne.s32.totalorder %s295_s0, %s155_s13  ;;  %s16_s10 = int_to_ptr.vmem [resolvable:$true] %s15_s10 }
   0x4   :  { %p159_p1 = scmp.lt.u32.totalorder %s155_s13, %s295_s0 }
   0x6   :  { %p161_p2 = pnand %p159_p1, %p156_p0 }
   0x8   :  { %164 = shalt.err (!%p161_p2)
}
   0x9   :  { %s165_s18 = scalar_lea.vmem %s16_s10, 256  ;;  %p170_p4 = scmp.lt.s32.totalorder %s16_s10, %s16_s10 }
   0xa   :  { %p166_p3 = scmp.ne.s32.totalorder %s16_s10, %s165_s18  ;;  %p171_p5 = scmp.lt.s32.totalorder %s165_s18, %s165_s18 }
   0xc   :  { %p172_p6 = por %p171_p5, %p170_p4 }
   0xe   :  { %p173_p7 = pnand %p172_p6, %p166_p3 }
  0x10   :  { %176 = shalt.err (!%p173_p7)
}
  0x11   :  { %s228_s19 = smov 128   ;;  %s229_s20 = smov 8  }
  0x12   :  { %21 = dma.hbm_to_vmem [thread:$0]  %s295_s0, 256, %s16_s10, [#allocation3], %s228_s19, %s228_s19, %s229_s20  }
  0x13   :  { %s230_s23 = smov [#allocation5]   ;;  %s177_s27 = scalar_lea.hbm %s296_s1, 256 }
  0x14   :  { %s27_s24 = sshll.u32 %s230_s23, 4  ;;  %p178_p8 = scmp.ne.s32.totalorder %s296_s1, %s177_s27  ;;  %s28_s24 = int_to_ptr.vmem [resolvable:$true] %s27_s24 }
  0x15   :  { %p181_p9 = scmp.lt.u32.totalorder %s177_s27, %s296_s1 }
  0x17   :  { %p183_p10 = pnand %p181_p9, %p178_p8 }
  0x19   :  { %186 = shalt.err (!%p183_p10)
}
  0x1a   :  { %s187_s4 = scalar_lea.vmem %s28_s24, 256  ;;  %p192_p12 = scmp.lt.s32.totalorder %s28_s24, %s28_s24 }
  0x1b   :  { %p188_p11 = scmp.ne.s32.totalorder %s28_s24, %s187_s4  ;;  %p193_p13 = scmp.lt.s32.totalorder %s187_s4, %s187_s4 }
  0x1d   :  { %p194_p0 = por %p193_p13, %p192_p12 }
  0x1f   :  { %p195_p1 = pnand %p194_p0, %p188_p11 }
  0x21   :  { %198 = shalt.err (!%p195_p1)
}
  0x22   :  { %33 = dma.hbm_to_vmem [thread:$0]  %s296_s1, 256, %s28_s24, [#allocation6], %s228_s19, %s228_s19, %s229_s20  }
  0x23   :  { %221 = dma.done.wait [#allocation3], 256  }
  0x24   :  { %222 = vsyncadd [#allocation3], 4294967040 }
  0x25   :  { %223 = dma.done.wait [#allocation6], 256  }
  0x26   :  { %224 = vsyncadd [#allocation6], 4294967040  ;;  %v271_v0 = vld [vmem:[#allocation2] sm:$0xff]  ;;  %v273_v1 = vld [vmem:[#allocation2 + $0x8] sm:$0xff]  ;;  %s231_s1 = smov [#allocation7]  }
  0x27   :  { %v44_v2 = vand.u32 2147483647, %v271_v0  ;;  %v45_v3 = vand.u32 2147483647, %v273_v1  ;;  %vm94_vm0 = vcmp.ge.f32.partialorder %v271_v0, 0.0  ;;  %vm95_vm1 = vcmp.ge.f32.partialorder %v273_v1, 0.0 }
  0x28   :  { %v42_v27 = vld [vmem:[#allocation5] sm:$0xff]  ;;  %v43_v29 = vld [vmem:[#allocation5 + $0x8] sm:$0xff]  ;;  %v52_v48 = vmax.f32 %v271_v0, 0.0  ;;  %v53_v50 = vmax.f32 %v273_v1, 0.0  ;;  %s122_s6 = sshll.u32 %s231_s1, 4  ;;  %s123_s6 = int_to_ptr.vmem [resolvable:$true] %s122_s6 }
  0x29   :  { %v46_v4 = vsub.f32 0.0, %v44_v2  ;;  %v47_v5 = vsub.f32 0.0, %v45_v3  ;;  %v54_v49 = vmul.f32 %v42_v27, %v271_v0  ;;  %v55_v51 = vmul.f32 %v43_v29, %v273_v1  ;;  %s199_s7 = scalar_lea.vmem %s123_s6, 128  ;;  %p204_p3 = scmp.lt.s32.totalorder %s123_s6, %s123_s6 }
  0x2a   :  { %p200_p2 = scmp.ne.s32.totalorder %s123_s6, %s199_s7  ;;  %p205_p4 = scmp.lt.s32.totalorder %s199_s7, %s199_s7 }
  0x2b   :  { %v48_v6 = vmul.f32 1.442695, %v46_v4  ;;  %v50_v7 = vmul.f32 1.442695, %v47_v5  ;;  %v56_v56 = vsub.f32 %v52_v48, %v54_v49  ;;  %v57_v57 = vsub.f32 %v53_v50, %v55_v51 }
  0x2c   :  { %p206_p5 = por %p205_p4, %p204_p3 }
  0x2d   :  { %139 = vpow2.f32 %v48_v6 }
  0x2e   :  { %141 = vpow2.f32 %v50_v7  ;;  %p207_p6 = pnand %p206_p5, %p200_p2 }
  0x37   :  { %v140_v8 = vpop.eup %139 }
  0x38   :  { %v142_v9 = vpop.eup %141  ;;  %v58_v10 = vadd.f32 1.0, %v140_v8  ;;  %v96_v24 = vsel %vm94_vm0, 1.0, %v140_v8  ;;  %v61_v34 = vmul.f32 -0.5, %v140_v8  ;;  %v64_v43 = vand.u32 2147483647, %v140_v8 }
  0x39   :  { %v67_v11 = vadd.f32 1.0, %v142_v9  ;;  %v97_v26 = vsel %vm95_vm1, 1.0, %v142_v9  ;;  %v70_v36 = vmul.f32 -0.5, %v142_v9  ;;  %v73_v47 = vand.u32 2147483647, %v142_v9 }
  0x3a   :  { %143 = vrcp.f32 %v58_v10  ;;  %v62_v40 = vadd.f32 1.0, %v61_v34  ;;  %vm65_vm2 = vcmp.lt.f32.partialorder %v64_v43, 0.0004427343 }
  0x3b   :  { %145 = vrcp.f32 %v67_v11  ;;  %v71_v44 = vadd.f32 1.0, %v70_v36  ;;  %vm74_vm3 = vcmp.lt.f32.partialorder %v73_v47, 0.0004427343 }
  0x3c   :  { %147 = vlog2.f32 %v58_v10  ;;  %v63_v53 = vmul.f32 %v140_v8, %v62_v40 }
  0x3d   :  { %149 = vlog2.f32 %v67_v11  ;;  %v72_v55 = vmul.f32 %v142_v9, %v71_v44 }
  0x44   :  { %v144_v12 = vpop.eup %143 }
  0x45   :  { %v146_v13 = vpop.eup %145  ;;  %v82_v14 = vmul.f32 %v144_v12, %v58_v10 }
  0x46   :  { %v83_v15 = vmul.f32 %v146_v13, %v67_v11  ;;  %v148_v42 = vpop.eup %147 }
  0x47   :  { %v84_v16 = vsub.f32 2.0, %v82_v14  ;;  %v150_v46 = vpop.eup %149  ;;  %v60_v52 = vmul.f32 0.6931472, %v148_v42 }
  0x48   :  { %v85_v17 = vsub.f32 2.0, %v83_v15  ;;  %v69_v54 = vmul.f32 0.6931472, %v150_v46 }
  0x49   :  { %v86_v18 = vmul.f32 %v144_v12, %v84_v16  ;;  %v66_v58 = vsel %vm65_vm2, %v63_v53, %v60_v52 }
  0x4a   :  { %v87_v19 = vmul.f32 %v146_v13, %v85_v17  ;;  %v75_v59 = vsel %vm74_vm3, %v72_v55, %v69_v54  ;;  %v76_v60 = vadd.f32 %v66_v58, %v56_v56 }
  0x4b   :  { %v88_v20 = vmul.f32 %v86_v18, %v58_v10  ;;  %v77_v62 = vadd.f32 %v75_v59, %v57_v57 }
  0x4c   :  { %v89_v21 = vmul.f32 %v87_v19, %v67_v11 }
  0x4d   :  { %v90_v22 = vsub.f32 2.0, %v88_v20 }
  0x4e   :  { %v91_v23 = vsub.f32 2.0, %v89_v21 }
  0x4f   :  { %v92_v25 = vmul.f32 %v90_v22, %v86_v18 }
  0x50   :  { %v93_v28 = vmul.f32 %v91_v23, %v87_v19 }
  0x51   :  { %v98_v30 = vmul.f32 %v96_v24, %v92_v25 }
  0x52   :  { %v99_v31 = vmul.f32 %v97_v26, %v93_v28 }
  0x53   :  { %v100_v32 = vsub.f32 %v98_v30, %v42_v27 }
  0x54   :  { %v101_v33 = vsub.f32 %v99_v31, %v43_v29 }
  0x55   :  { %v132_v35 = vadd.f32 -1.0, %v100_v32 }
  0x56   :  { %v133_v37 = vadd.f32 -1.0, %v101_v33 }
  0x57   :  { %v104_v38 = vmul.f32 19.96008, %v132_v35 }
  0x58   :  { %v105_v39 = vmul.f32 19.96008, %v133_v37 }
  0x59   :  { %v106_v41 = vmul.f32 1.442695, %v104_v38 }
  0x5a   :  { %v108_v45 = vmul.f32 1.442695, %v105_v39 }
  0x5b   :  { %151 = vpow2.f32 %v106_v41 }
  0x5c   :  { %153 = vpow2.f32 %v108_v45 }
  0x65   :  { %v152_v61 = vpop.eup %151 }
  0x66   :  { %v154_v63 = vpop.eup %153  ;;  %v110_v0 = vsub.f32 1.0, %v152_v61 }
  0x67   :  { %v111_v2 = vsub.f32 1.0, %v154_v63 }
  0x68   :  { %v112_v3 = vmul.f32 %v110_v0, %v76_v60 }
  0x69   :  { %v113_v1 = vmul.f32 %v111_v2, %v77_v62 }
  0x6b   :  { %v114_v4 = vadd.f32 %v113_v1, %v112_v3 }
  0x6d   :  { %115 = vst [vmem:[#allocation7] sm:$0xff] %v114_v4 }
  0x6e   :  { %210 = shalt.err (!%p207_p6)
}
  0x6f   :  { %s211_s10 = scalar_lea.hbm %s297_s2, 128 }
  0x70   :  { %p212_p7 = scmp.ne.s32.totalorder %s297_s2, %s211_s10  ;;  %p215_p8 = scmp.lt.u32.totalorder %s211_s10, %s297_s2 }
  0x72   :  { %p217_p9 = pnand %p215_p8, %p212_p7 }
  0x74   :  { %220 = shalt.err (!%p217_p9)
}
  0x75   :  { %125 = dma.vmem_to_hbm [thread:$0]  %s123_s6, 128, %s297_s2, [#allocation4]  }
  0x76   :  { %225 = dma.done.wait [#allocation4], 128  }
  0x77   :  { %226 = vsyncadd [#allocation4], 4294967168 }
  0x78   :  { %129 = vsyncpa [#allocation3], 1 }
  0x79   :  { %130 = vsyncpa [#allocation6], 1 }
  0x7a   :  { %131 = vsyncpa [#allocation4], 1 }

</bundles_post_ra>
